<compile_context>
chip_gen: v6e
topology: v6e:2x2x1
jax: 0.10.0
libtpu: 0.0.40
codegen_flags: <defaults>
</compile_context>

<pallas_src>
import math

import jax
import jax.numpy as jnp
from jax.experimental import pallas as pl
from jax.experimental.pallas import tpu as pltpu

IN_FEATURES = 8
HIDDEN = 32
PACK = 4                      # batch rows packed per lane-dense row
IN_P = IN_FEATURES * PACK     # 32  (packed input width)
OUT_P = HIDDEN * PACK         # 128 (packed output width, full lane width)


def _round_up(n, m):
    return ((n + m - 1) // m) * m


def _cdiv(a, b):
    return -(-a // b)


def _mlp_kernel(x_ref, w1_ref, b1_ref, w2_ref, b2_ref, o_ref):
    # x: (TM, 32) f32 (4 obs packed per row), w1: (32, 128) bf16 block-diag,
    # b1: (1, 128) f32, w2: (128, 128) bf16 block-diag, b2: (1, 128) f32,
    # o: (TM, 128) f32 -> unmasked, lane-dense stores.
    x = x_ref[...].astype(w1_ref.dtype)                      # cast in-kernel
    h = jnp.dot(x, w1_ref[...], preferred_element_type=jnp.float32)
    h = jnp.maximum(h + b1_ref[...], 0.0)
    o = jnp.dot(h.astype(w2_ref.dtype), w2_ref[...],
                preferred_element_type=jnp.float32)
    o = jnp.maximum(o + b2_ref[...], 0.0)
    o_ref[...] = o.astype(o_ref.dtype)


def polecart_forward(x, w1, b1, w2, b2, *, tm_packed=2048,
                     compute_dtype=jnp.bfloat16):
    """x: (B, ...) whose trailing dims flatten to 8.  Returns (B, 32) f32."""
    b = x.shape[0]
    x2d = x.reshape(b, -1)                 # flatten(start_dim=1)  (glue)
    assert x2d.shape[1] == IN_FEATURES, x2d.shape

    # Packed-row tiling: each packed row holds PACK=4 observations.  Keep the
    # tile a multiple of 8 (sublanes) and cap it at ~half the packed batch so
    # v7x's two TensorCores get >= 2 "parallel" tiles whenever B permits.
    packed_rows = _cdiv(b, PACK)
    tm_eff = max(8, min(tm_packed, _round_up(_cdiv(packed_rows, 2), 8)))
    padded_packed = _round_up(packed_rows, tm_eff)
    padded_b = padded_packed * PACK

    if padded_b != b:
        x2d = jnp.pad(x2d, ((0, padded_b - b), (0, 0)))
    xp = x2d.reshape(padded_packed, IN_P)  # free row-major reshape, stays f32

    # Block-diagonal weight repack (tiny: 32x128 + 128x128 bf16 ~ 40 KB).
    w1c = w1.astype(compute_dtype)
    w2c = w2.astype(compute_dtype)
    w1b = jax.scipy.linalg.block_diag(*([w1c] * PACK))       # (32, 128)
    w2b = jax.scipy.linalg.block_diag(*([w2c] * PACK))       # (128, 128)
    b1b = jnp.tile(b1.reshape(1, HIDDEN).astype(jnp.float32), (1, PACK))
    b2b = jnp.tile(b2.reshape(1, HIDDEN).astype(jnp.float32), (1, PACK))
    # NOTE: on v6e/v7x a 256-wide block-diag for layer 2 would exactly fill
    # the 256x256 MXU; skipped since the kernel is HBM-bound, not MXU-bound.

    out_packed = pl.pallas_call(
        _mlp_kernel,
        out_shape=jax.ShapeDtypeStruct((padded_packed, OUT_P), jnp.float32),
        grid=(padded_packed // tm_eff,),
        in_specs=[
            pl.BlockSpec((tm_eff, IN_P), lambda i: (i, 0)),
            pl.BlockSpec((IN_P, OUT_P), lambda i: (0, 0)),
            pl.BlockSpec((1, OUT_P), lambda i: (0, 0)),
            pl.BlockSpec((OUT_P, OUT_P), lambda i: (0, 0)),
            pl.BlockSpec((1, OUT_P), lambda i: (0, 0)),
        ],
        out_specs=pl.BlockSpec((tm_eff, OUT_P), lambda i: (i, 0)),
        compiler_params=pltpu.CompilerParams(
            dimension_semantics=("parallel",)),
    )(xp, w1b, b1b, w2b, b2b)

    out = out_packed.reshape(padded_b, HIDDEN)   # free row-major reshape
    if padded_b != b:
        out = out[:b]                            # only when batch was padded
    return out


def _reference(x, w1, b1, w2, b2, compute_dtype=jnp.bfloat16):
    """Plain-JAX reference mirroring the kernel's bf16/f32-accum numerics."""
    x2d = x.reshape(x.shape[0], -1).astype(compute_dtype)
    h = jnp.dot(x2d, w1.astype(compute_dtype),
                preferred_element_type=jnp.float32) + b1
    h = jnp.maximum(h, 0.0)
    o = jnp.dot(h.astype(compute_dtype), w2.astype(compute_dtype),
                preferred_element_type=jnp.float32) + b2
    return jnp.maximum(o, 0.0)


def init_params(key):
    """Deterministic init mimicking nn.Linear default (U(-1/sqrt(fan_in), +))."""
    k1, k2, k3, k4 = jax.random.split(key, 4)
    bound1 = 1.0 / math.sqrt(IN_FEATURES)
    bound2 = 1.0 / math.sqrt(HIDDEN)
    # Stored pre-transposed: (in, out).
    w1 = jax.random.uniform(k1, (IN_FEATURES, HIDDEN), jnp.float32, -bound1, bound1)
    b1 = jax.random.uniform(k2, (1, HIDDEN), jnp.float32, -bound1, bound1)
    w2 = jax.random.uniform(k3, (HIDDEN, HIDDEN), jnp.float32, -bound2, bound2)
    b2 = jax.random.uniform(k4, (1, HIDDEN), jnp.float32, -bound2, bound2)
    return w1, b1, w2, b2


if __name__ == "__main__":
    key = jax.random.PRNGKey(0)
    kx, kx2, kx3, kp = jax.random.split(key, 4)
    w1, b1, w2, b2 = init_params(kp)

    # Small RL-style batch: trailing dims (2, 4) flatten to the 8-dim obs
    # (exercises flatten(start_dim=1), padding, and the single-tile path).
    x_small = jax.random.normal(kx, (4, 2, 4), jnp.float32)
    out_small = polecart_forward(x_small, w1, b1, w2, b2)
    jax.block_until_ready(out_small)
    assert out_small.shape == (4, HIDDEN)
    ref_small = _reference(x_small, w1, b1, w2, b2)
    assert jnp.allclose(out_small, ref_small, atol=1e-2, rtol=1e-2)

    # Non-tile-multiple batch: pad/slice path + multi-tile pipelined grid.
    x_big = jax.random.normal(kx2, (1000, IN_FEATURES), jnp.float32)
    out_big = polecart_forward(x_big, w1, b1, w2, b2)
    jax.block_until_ready(out_big)
    assert out_big.shape == (1000, HIDDEN)
    ref_big = _reference(x_big, w1, b1, w2, b2)
    assert jnp.allclose(out_big, ref_big, atol=1e-2, rtol=1e-2)

    # Tile-aligned batch: no pad, no output slice, 2 "parallel" tiles.
    x_al = jax.random.normal(kx3, (1024, IN_FEATURES), jnp.float32)
    out_al = polecart_forward(x_al, w1, b1, w2, b2)
    jax.block_until_ready(out_al)
    assert out_al.shape == (1024, HIDDEN)
    ref_al = _reference(x_al, w1, b1, w2, b2)
    assert jnp.allclose(out_al, ref_al, atol=1e-2, rtol=1e-2)

    print("KERNEL_OK")
</pallas_src>

<mosaic_0001>
module attributes {stable_mosaic.version = 11 : i64} {
  func.func @_mlp_kernel(%arg0: i32, %arg1: memref<8x32xf32, #tpu.memory_space<vmem>>, %arg2: memref<32x128xbf16, #tpu.memory_space<vmem>>, %arg3: memref<1x128xf32, #tpu.memory_space<vmem>>, %arg4: memref<128x128xbf16, #tpu.memory_space<vmem>>, %arg5: memref<1x128xf32, #tpu.memory_space<vmem>>, %arg6: memref<8x128xf32, #tpu.memory_space<vmem>>) attributes {dimension_semantics = [#tpu.dimension_semantics<parallel>], iteration_bounds = array<i64: 1>, scalar_prefetch = 0 : i64, scratch_operands = 0 : i64, tpu.core_type = #tpu.core_type<tc>, window_params = [{transform_indices = @transform_0, window_bounds = array<i64: 8, 32>}, {pipeline_mode = #tpu.pipeline_mode<synchronous>, transform_indices = @transform_1, window_bounds = array<i64: 32, 128>}, {pipeline_mode = #tpu.pipeline_mode<synchronous>, transform_indices = @transform_2, window_bounds = array<i64: 1, 128>}, {pipeline_mode = #tpu.pipeline_mode<synchronous>, transform_indices = @transform_3, window_bounds = array<i64: 128, 128>}, {pipeline_mode = #tpu.pipeline_mode<synchronous>, transform_indices = @transform_4, window_bounds = array<i64: 1, 128>}, {transform_indices = @transform_5, window_bounds = array<i64: 8, 128>}]} {
    %c0 = arith.constant 0 : index
    %c0_0 = arith.constant 0 : index
    %0 = vector.load %arg1[%c0, %c0_0] : memref<8x32xf32, #tpu.memory_space<vmem>>, vector<8x32xf32>
    %1 = arith.truncf %0 : vector<8x32xf32> to vector<8x32xbf16>
    %c0_1 = arith.constant 0 : index
    %c0_2 = arith.constant 0 : index
    %2 = vector.load %arg2[%c0_1, %c0_2] : memref<32x128xbf16, #tpu.memory_space<vmem>>, vector<32x128xbf16>
    %cst = arith.constant dense<0.000000e+00> : vector<8x128xf32>
    %3 = tpu.matmul %1, %2, %cst {dimension_numbers = #tpu.dot_dimension_numbers<[1], [0], [0], [1], [0, 0, 1, 1], [], []>} : vector<8x32xbf16>, vector<32x128xbf16>, vector<8x128xf32> -> vector<8x128xf32>
    %c0_3 = arith.constant 0 : index
    %c0_4 = arith.constant 0 : index
    %4 = vector.load %arg3[%c0_3, %c0_4] : memref<1x128xf32, #tpu.memory_space<vmem>>, vector<1x128xf32>
    %5 = vector.broadcast %4 : vector<1x128xf32> to vector<8x128xf32>
    %6 = arith.addf %3, %5 : vector<8x128xf32>
    %cst_5 = arith.constant 0.000000e+00 : f32
    %7 = vector.broadcast %cst_5 : f32 to vector<8x128xf32>
    %8 = arith.maximumf %6, %7 : vector<8x128xf32>
    %9 = arith.truncf %8 : vector<8x128xf32> to vector<8x128xbf16>
    %c0_6 = arith.constant 0 : index
    %c0_7 = arith.constant 0 : index
    %10 = vector.load %arg4[%c0_6, %c0_7] : memref<128x128xbf16, #tpu.memory_space<vmem>>, vector<128x128xbf16>
    %cst_8 = arith.constant dense<0.000000e+00> : vector<8x128xf32>
    %11 = tpu.matmul %9, %10, %cst_8 {dimension_numbers = #tpu.dot_dimension_numbers<[1], [0], [0], [1], [0, 0, 1, 1], [], []>} : vector<8x128xbf16>, vector<128x128xbf16>, vector<8x128xf32> -> vector<8x128xf32>
    %c0_9 = arith.constant 0 : index
    %c0_10 = arith.constant 0 : index
    %12 = vector.load %arg5[%c0_9, %c0_10] : memref<1x128xf32, #tpu.memory_space<vmem>>, vector<1x128xf32>
    %13 = vector.broadcast %12 : vector<1x128xf32> to vector<8x128xf32>
    %14 = arith.addf %11, %13 : vector<8x128xf32>
    %cst_11 = arith.constant 0.000000e+00 : f32
    %15 = vector.broadcast %cst_11 : f32 to vector<8x128xf32>
    %16 = arith.maximumf %14, %15 : vector<8x128xf32>
    %c0_12 = arith.constant 0 : index
    %c0_13 = arith.constant 0 : index
    %17 = vector.load %arg6[%c0_12, %c0_13] : memref<8x128xf32, #tpu.memory_space<vmem>>, vector<8x128xf32>
    tpu.vector_store %arg6[%c0_12, %c0_13], %16 {strides = array<i32>} : memref<8x128xf32, #tpu.memory_space<vmem>>, vector<8x128xf32>,
    return
  }
  func.func @transform_0(%arg0: i32) -> (i32, i32) {
    %c0_i32 = arith.constant 0 : i32
    %c0_i32_0 = arith.constant 0 : i32
    return %arg0, %c0_i32 : i32, i32
  }
  func.func @transform_1(%arg0: i32) -> (i32, i32) {
    %c0_i32 = arith.constant 0 : i32
    %c0_i32_0 = arith.constant 0 : i32
    %c0_i32_1 = arith.constant 0 : i32
    return %c0_i32, %c0_i32_0 : i32, i32
  }
  func.func @transform_2(%arg0: i32) -> (i32, i32) {
    %c0_i32 = arith.constant 0 : i32
    %c0_i32_0 = arith.constant 0 : i32
    %c0_i32_1 = arith.constant 0 : i32
    return %c0_i32, %c0_i32_0 : i32, i32
  }
  func.func @transform_3(%arg0: i32) -> (i32, i32) {
    %c0_i32 = arith.constant 0 : i32
    %c0_i32_0 = arith.constant 0 : i32
    %c0_i32_1 = arith.constant 0 : i32
    return %c0_i32, %c0_i32_0 : i32, i32
  }
  func.func @transform_4(%arg0: i32) -> (i32, i32) {
    %c0_i32 = arith.constant 0 : i32
    %c0_i32_0 = arith.constant 0 : i32
    %c0_i32_1 = arith.constant 0 : i32
    return %c0_i32, %c0_i32_0 : i32, i32
  }
  func.func @transform_5(%arg0: i32) -> (i32, i32) {
    %c0_i32 = arith.constant 0 : i32
    %c0_i32_0 = arith.constant 0 : i32
    return %arg0, %c0_i32 : i32, i32
  }
}

</mosaic_0001>

<bundles_post_ra>
// kernel: tpu_custom_call.1
= control target key start
LH: loop header
LB: loop body
LE: loop exit
PB: predicated region body
PF: predicated region fallthrough
CT: control target
= control target key end

     0   :  { %10 = vsyncpa [#allocation3], 0  ;;  %s474_s0 = inlined_call_operand.hbm [shape: f32[8,32], index: 0, kind: input, shape index: {}]   ;;  %s475_s1 = inlined_call_operand.hbm [shape: bf16[32,128], index: 1, kind: input, shape index: {}]   ;;  %s476_s2 = inlined_call_operand.vmem [shape: f32[1,128], index: 2, kind: input, shape index: {}]   ;;  %s477_s3 = inlined_call_operand.hbm [shape: bf16[128,128], index: 3, kind: input, shape index: {}]   ;;  %s478_s4 = inlined_call_operand.vmem [shape: f32[1,128], index: 4, kind: input, shape index: {}]   ;;  %s479_s5 = inlined_call_operand.hbm [shape: f32[8,128], index: 5, kind: output, shape index: {}]  }
   0x1   :  { %11 = vsyncpa [#allocation6], 0 }
   0x2   :  { %12 = vsyncpa [#allocation4], 0  ;;  %s418_s18 = smov [#allocation5]  }
   0x3   :  { %s28_s19 = sshll.u32 %s418_s18, 4  ;;  %s29_s19 = int_to_ptr.vmem [resolvable:$true] %s28_s19 }
   0x4   :  { %s340_s20 = scalar_lea.vmem %s29_s19, 256  ;;  %p345_p1 = scmp.lt.s32.totalorder %s29_s19, %s29_s19 }
   0x5   :  { %p341_p0 = scmp.ne.s32.totalorder %s29_s19, %s340_s20  ;;  %p346_p2 = scmp.lt.s32.totalorder %s340_s20, %s340_s20 }
   0x7   :  { %p347_p3 = por %p346_p2, %p345_p1 }
   0x9   :  { %p348_p4 = pnand %p347_p3, %p341_p0 }
   0xb   :  { %351 = shalt.err (!%p348_p4)
}
   0xc   :  { %s419_s21 = smov 64   ;;  %s420_s22 = smov 4  }
   0xd   :  { %34 = dma.hbm_to_vmem [thread:$0]  %s475_s1, 256, %s29_s19, [#allocation6], %s419_s21, %s419_s21, %s420_s22  }
   0xe   :  { %s421_s25 = smov [#allocation2]   ;;  %s422_s27 = smov [#allocation7]  }
   0xf   :  { %s19_s26 = sshll.u32 %s421_s25, 4  ;;  %s42_s28 = sshll.u32 %s422_s27, 4  ;;  %s20_s26 = int_to_ptr.vmem [resolvable:$true] %s19_s26  ;;  %s43_s28 = int_to_ptr.vmem [resolvable:$true] %s42_s28 }
  0x10   :  { %s360_s29 = scalar_lea.vmem %s20_s26, 128  ;;  %p365_p6 = scmp.lt.s32.totalorder %s20_s26, %s20_s26 }
  0x11   :  { %p361_p5 = scmp.ne.s32.totalorder %s20_s26, %s360_s29  ;;  %p366_p7 = scmp.lt.s32.totalorder %s360_s29, %s360_s29 }
  0x13   :  { %p367_p8 = por %p366_p7, %p365_p6 }
  0x15   :  { %p368_p9 = pnand %p367_p8, %p361_p5 }
  0x17   :  { %371 = shalt.err (!%p368_p9)
}
  0x18   :  { %22 = dma.hbm_to_vmem [thread:$0]  %s474_s0, 128, %s20_s26, [#allocation3]  }
  0x19   :  { %s380_s7 = scalar_lea.vmem %s43_s28, 1024  ;;  %p385_p11 = scmp.lt.s32.totalorder %s43_s28, %s43_s28 }
  0x1a   :  { %p381_p10 = scmp.ne.s32.totalorder %s43_s28, %s380_s7  ;;  %p386_p12 = scmp.lt.s32.totalorder %s380_s7, %s380_s7 }
  0x1c   :  { %p387_p13 = por %p386_p12, %p385_p11 }
  0x1e   :  { %p388_p0 = pnand %p387_p13, %p381_p10 }
  0x20   :  { %391 = shalt.err (!%p388_p0)
}
  0x21   :  { %48 = dma.hbm_to_vmem [thread:$0]  %s477_s3, 1024, %s43_s28, [#allocation6], %s419_s21, %s419_s21, %s420_s22  }
  0x22   :  { %412 = dma.done.wait [#allocation3], 128  }
  0x23   :  { %413 = vsyncadd [#allocation3], 4294967168 }
  0x24   :  { %414 = dma.done.wait [#allocation6], 1280  }
  0x25   :  { %415 = vsyncadd [#allocation6], 4294966016  ;;  %v423_v0 = vmov 0.0   ;;  %vm424_vm0 = vmmov 0   ;;  %v322_v1 = vld [vmem:[#allocation5 + $0x8] sm:$0xff]   ;;  %v323_v2 = vld [vmem:[#allocation5] sm:$0xff]  }
  0x26   :  { %286 = vmatprep.subr.bf16.mxu0 %v423_v0  ;;  %290 = vmatprep.mubr.msk.bf16.mxu0 %vm424_vm0, %v423_v0  ;;  %v61_v3 = vld [vmem:[#allocation2] sm:$0xff]  ;;  %v324_v4 = vld [vmem:[#allocation7 + $0x38] sm:$0xff]   ;;  %v325_v6 = vld [vmem:[#allocation7 + $0x30] sm:$0xff]   ;;  %vm86_vm1 = vcmask 261120   ;;  %s425_s11 = smov [#allocation8]  }
  0x27   :  { %294 = vmatprep.subr.bf16.mxu1 %v423_v0  ;;  %310 = vmatprep.mubr.msk.bf16.mxu1 %vm424_vm0, %v423_v0  ;;  %v62_v5 = vpack.c.bf16 %v61_v3, %v61_v3  ;;  %v326_v7 = vld [vmem:[#allocation7 + $0x28] sm:$0xff]   ;;  %v327_v8 = vld [vmem:[#allocation7 + $0x20] sm:$0xff]   ;;  %v328_v9 = vld [vmem:[#allocation7 + $0x18] sm:$0xff]   ;;  %s251_s12 = sshll.u32 %s425_s11, 4  ;;  %s252_s12 = int_to_ptr.vmem [resolvable:$true] %s251_s12 }
  0x28   :  { %287 = vmatpush3.bf16.msra.mxu0 %v322_v1  ;;  %295 = vmatpush3.bf16.msra.mxu1 %v324_v4  ;;  %v329_v10 = vld [vmem:[#allocation7 + $0x10] sm:$0xff]   ;;  %v330_v11 = vld [vmem:[#allocation7 + $0x8] sm:$0xff]   ;;  %v331_v12 = vld [vmem:[#allocation7] sm:$0xff]   ;;  %p397_p2 = scmp.lt.s32.totalorder %s252_s12, %s252_s12 }
  0x29   :  { %288 = vmatprep.subr.bf16.mxu0 %v423_v0  ;;  %296 = vmatprep.subr.bf16.mxu1 %v423_v0  ;;  %v261_v13 = vld [vmem:[%s476_s2] ss:$0 sm:$0xff]  ;;  %s392_s2 = scalar_lea.vmem %s252_s12, 128 }
  0x2a   :  { %v265_v21 = vld [vmem:[%s478_s4] ss:$0 sm:$0xff]  ;;  %p393_p1 = scmp.ne.s32.totalorder %s252_s12, %s392_s2  ;;  %p398_p3 = scmp.lt.s32.totalorder %s392_s2, %s392_s2 }
  0x2c   :  { %289 = vmatpush3.bf16.msra.mxu0 %v323_v2  ;;  %297 = vmatpush3.bf16.msra.mxu1 %v325_v6  ;;  %p399_p4 = por %p398_p3, %p397_p2 }
  0x2d   :  { %298 = vmatprep.subr.bf16.mxu1 %v423_v0 }
  0x2e   :  { %p400_p5 = pnand %p399_p4, %p393_p1 }
  0x2f   :  { %291 = vmatmul.mubr.msk.bf16.vlgmr.msra.gmra.mxu0 %vm86_vm1, %v62_v5 }
  0x30   :  { %299 = vmatpush3.bf16.msra.mxu1 %v326_v7 }
  0x31   :  { %300 = vmatprep.subr.bf16.mxu1 %v423_v0 }
  0x34   :  { %301 = vmatpush3.bf16.msra.mxu1 %v327_v8 }
  0x35   :  { %302 = vmatprep.subr.bf16.mxu1 %v423_v0 }
  0x38   :  { %303 = vmatpush3.bf16.msra.mxu1 %v328_v9 }
  0x39   :  { %304 = vmatprep.subr.bf16.mxu1 %v423_v0 }
  0x3c   :  { %305 = vmatpush3.bf16.msra.mxu1 %v329_v10 }
  0x3d   :  { %306 = vmatprep.subr.bf16.mxu1 %v423_v0 }
  0x40   :  { %307 = vmatpush3.bf16.msra.mxu1 %v330_v11 }
  0x41   :  { %308 = vmatprep.subr.bf16.mxu1 %v423_v0 }
  0x44   :  { %309 = vmatpush3.bf16.msra.mxu1 %v331_v12 }
  0xef   :  { %v124_v14 = vpop.f32.mrf.mxu0 }
  0xf0   :  { %v125_v15 = vadd.f32 %v261_v13, %v124_v14 }
  0xf1   :  { %v292_v16 = vpop.f32.mrf.mxu0 }
  0xf2   :  { %v130_v17 = vmax.f32 %v125_v15, 0.0 }
  0xf3   :  { %v127_v18 = vpop.f32.mrf.mxu0 }
  0xf4   :  { %v131_v19 = vpack.c.bf16 %v130_v17, %v130_v17 }
  0xf5   :  { %v293_v20 = vpop.f32.mrf.mxu0 }
  0xf6   :  { %311 = vmatmul.mubr.bf16.vlgmr.msra.gmra.mxu1 %v131_v19 }
 0x1b6   :  { %v237_v22 = vpop.f32.mrf.mxu1 }
 0x1b7   :  { %v238_v23 = vadd.f32 %v265_v21, %v237_v22 }
 0x1b8   :  { %v312_v24 = vpop.f32.mrf.mxu1 }
 0x1b9   :  { %v243_v25 = vmax.f32 %v238_v23, 0.0 }
 0x1ba   :  { %v240_v26 = vpop.f32.mrf.mxu1 }
 0x1bb   :  { %244 = vst [vmem:[#allocation8] sm:$0xff] %v243_v25 }
 0x1bc   :  { %v313_v27 = vpop.f32.mrf.mxu1 }
 0x1bd   :  { %403 = shalt.err (!%p400_p5)
}
 0x1be   :  { %254 = dma.vmem_to_hbm [thread:$0]  %s252_s12, 128, %s479_s5, [#allocation4]  }
 0x1bf   :  { %416 = dma.done.wait [#allocation4], 128  }
 0x1c0   :  { %417 = vsyncadd [#allocation4], 4294967168 }
 0x1c1   :  { %258 = vsyncpa [#allocation3], 1 }
 0x1c2   :  { %259 = vsyncpa [#allocation6], 1 }
 0x1c3   :  { %260 = vsyncpa [#allocation4], 1 }

</bundles_post_ra>
